<compile_context>
chip_gen: v5e
topology: v5e:2x2
jax: 0.10.0
libtpu: 0.0.40
codegen_flags: <defaults>
</compile_context>

<pallas_src>
import jax
import jax.numpy as jnp
from jax.experimental import pallas as pl
from jax.experimental.pallas import tpu as pltpu


def velocity_field_kernel(x_ref, w1_ref, b1_ref, w2_ref, b2_ref,
                          w3_ref, b3_ref, out_ref):
    """One lane tile of the 3-layer MLP, batch along lanes.

    x_ref  : (2, T)    batch columns (pipelined HBM->VMEM)
    w1_ref : (64, 2)   first-layer weights for the x rows (VMEM-resident)
    b1_ref : (64, 1)   first-layer bias with scalar t already folded in
    w2_ref : (64, 64), b2_ref : (64, 1)
    w3_ref : (2, 64),  b3_ref : (2, 1)
    out_ref: (2, T)
    """
    xT = x_ref[...]                     # (2, T)
    w1 = w1_ref[...]                    # (64, 2)

    # Layer 1 on the VPU: K=2 is far too shallow for the MXU.  Both broadcasts
    # are cheap splats over fully populated 128-lane vregs: (64,1) lane-splats
    # of the weight columns times (1,T) sublane-broadcasts of the x rows.
    h = jnp.tanh(w1[:, 0:1] * xT[0:1, :] + w1[:, 1:2] * xT[1:2, :] + b1_ref[...])

    # Layer 2: (64, 64) @ (64, T) on the MXU, f32 accumulate.
    h = jnp.tanh(
        jnp.dot(w2_ref[...], h, preferred_element_type=jnp.float32) + b2_ref[...]
    )

    # Layer 3: (2, 64) @ (64, T); lane-dense (2, T) output -> unmasked stores.
    out_ref[...] = (
        jnp.dot(w3_ref[...], h, preferred_element_type=jnp.float32) + b3_ref[...]
    ).astype(out_ref.dtype)


def velocity_field_forward(x, t, params, *, tile_n=4096):
    """x: (N, 2) f32, t: scalar time (any shape reducible to ()).  Returns (N, 2) f32."""
    w1, b1, w2, b2, w3, b3 = params
    n = x.shape[0]

    # Fold scalar t into the first-layer bias (mathematically identical to the
    # torch concat):  tanh([x, t] @ W1 + b1) == tanh(x @ W1[:2] + (t*W1[2] + b1)).
    # Then transpose everything so the batch dimension runs along lanes.
    t_scalar = t.reshape(()).astype(jnp.float32)
    w1_xT = w1[:2, :].T                          # (64, 2)
    b1_effT = (t_scalar * w1[2:3, :] + b1).T     # (64, 1)
    w2T, b2T = w2.T, b2.T                        # (64, 64), (64, 1)
    w3T, b3T = w3.T, b3.T                        # (2, 64), (2, 1)
    xT = x.T                                     # (2, N)

    # Lane-axis tile: multiples of 128 lanes (or the full axis when N <= 128).
    # Aim for >= 2 grid steps so both v7x TensorCores get work, capped at tile_n.
    if n <= 128:
        tile = n
    else:
        half = -(-n // 2)                        # ceil(n / 2)
        half = -(-half // 128) * 128             # round up to 128-lane tiles
        tile = max(128, min((tile_n // 128) * 128, half))
    grid = (pl.cdiv(n, tile),)

    lane_spec = pl.BlockSpec((2, tile), lambda i: (0, i))
    # TODO(synk): weights could use pipeline_mode=pl.Buffered(1) to drop their
    # second pipeline buffer; they total only tens of KiB so it is left default.
    const_spec = lambda arr: pl.BlockSpec(arr.shape, lambda i: (0, 0))

    # Advisory cost estimate for the XLA scheduler.
    flops = 2 * n * (2 * 64 + 64 * 64 + 64 * 2)
    transcendentals = 2 * 64 * n
    bytes_accessed = 4 * (xT.size + 2 * n) + 4 * sum(
        a.size for a in (w1_xT, b1_effT, w2T, b2T, w3T, b3T))

    outT = pl.pallas_call(
        velocity_field_kernel,
        out_shape=jax.ShapeDtypeStruct((2, n), jnp.float32),
        grid_spec=pltpu.PrefetchScalarGridSpec(
            num_scalar_prefetch=0,
            grid=grid,
            in_specs=[
                lane_spec,             # xT      : (2, tile), pipelined over the grid
                const_spec(w1_xT),     # (64, 2)   resident across steps
                const_spec(b1_effT),   # (64, 1)
                const_spec(w2T),       # (64, 64)
                const_spec(b2T),       # (64, 1)
                const_spec(w3T),       # (2, 64)
                const_spec(b3T),       # (2, 1)
            ],
            out_specs=lane_spec,
        ),
        compiler_params=pltpu.CompilerParams(
            dimension_semantics=("parallel",),      # shard lane tiles across TCs (v7x)
            vmem_limit_bytes=32 * 1024 * 1024,      # safe on v5e/v6e/v7x
        ),
        cost_estimate=pl.CostEstimate(
            flops=flops,
            transcendentals=transcendentals,
            bytes_accessed=bytes_accessed,
        ),
    )(xT, w1_xT, b1_effT, w2T, b2T, w3T, b3T)

    return outT.T                                   # back to (N, 2)


def init_params(key):
    """Deterministic init matching nn.Linear shapes (uniform +-1/sqrt(fan_in))."""
    ks = jax.random.split(key, 6)

    def lin(kw, kb, fan_in, fan_out):
        bound = 1.0 / jnp.sqrt(fan_in)
        w = jax.random.uniform(kw, (fan_in, fan_out), jnp.float32, -bound, bound)
        b = jax.random.uniform(kb, (1, fan_out), jnp.float32, -bound, bound)
        return w, b

    w1, b1 = lin(ks[0], ks[1], 3, 64)
    w2, b2 = lin(ks[2], ks[3], 64, 64)
    w3, b3 = lin(ks[4], ks[5], 64, 2)
    return (w1, b1, w2, b2, w3, b3)


def reference_forward(x, t, params):
    """Pure-JAX reference following the torch semantics (explicit concat of t)."""
    w1, b1, w2, b2, w3, b3 = params
    n = x.shape[0]
    inp = jnp.concatenate(
        [x, jnp.broadcast_to(t.reshape(1, 1), (n, 1)).astype(x.dtype)], axis=1)
    h = jnp.tanh(inp @ w1 + b1)
    h = jnp.tanh(h @ w2 + b2)
    return h @ w3 + b3


if __name__ == "__main__":
    key = jax.random.PRNGKey(0)
    k_p, _ = jax.random.split(key, 2)
    params = init_params(k_p)

    def check(n, seed):
        kx = jax.random.PRNGKey(seed)
        x = jax.random.normal(kx, (n, 2), dtype=jnp.float32)
        t = jax.random.uniform(jax.random.fold_in(kx, 1), (1, 1), dtype=jnp.float32)
        out = jax.block_until_ready(velocity_field_forward(x, t, params))
        ref = reference_forward(x, t, params)
        assert out.shape == (n, 2)
        assert jnp.allclose(out, ref, atol=1e-4, rtol=1e-4), \
            f"mismatch vs JAX reference (N={n})"

    check(512, 1)   # 2 grid steps: pipelining + dual-TC sharding on v7x
    check(300, 2)   # ragged tail: second block lane-masked (44 valid lanes)
    check(8, 3)     # tiny batch, single full-extent block
    check(3, 4)     # N < 8, block smaller than one sublane tile

    print("KERNEL_OK")
</pallas_src>

<mosaic_0001>
module attributes {stable_mosaic.version = 11 : i64} {
  func.func @velocity_field_kernel(%arg0: i32, %arg1: memref<2x256xf32, #tpu.memory_space<vmem>>, %arg2: memref<64x2xf32, #tpu.memory_space<vmem>>, %arg3: memref<64x1xf32, #tpu.memory_space<vmem>>, %arg4: memref<64x64xf32, #tpu.memory_space<vmem>>, %arg5: memref<64x1xf32, #tpu.memory_space<vmem>>, %arg6: memref<2x64xf32, #tpu.memory_space<vmem>>, %arg7: memref<2x1xf32, #tpu.memory_space<vmem>>, %arg8: memref<2x256xf32, #tpu.memory_space<vmem>>) attributes {dimension_semantics = [#tpu.dimension_semantics<parallel>], iteration_bounds = array<i64: 2>, scalar_prefetch = 0 : i64, scratch_operands = 0 : i64, tpu.core_type = #tpu.core_type<tc>, window_params = [{transform_indices = @transform_0, window_bounds = array<i64: 2, 256>}, {pipeline_mode = #tpu.pipeline_mode<synchronous>, transform_indices = @transform_1, window_bounds = array<i64: 64, 2>}, {pipeline_mode = #tpu.pipeline_mode<synchronous>, transform_indices = @transform_2, window_bounds = array<i64: 64, 1>}, {pipeline_mode = #tpu.pipeline_mode<synchronous>, transform_indices = @transform_3, window_bounds = array<i64: 64, 64>}, {pipeline_mode = #tpu.pipeline_mode<synchronous>, transform_indices = @transform_4, window_bounds = array<i64: 64, 1>}, {pipeline_mode = #tpu.pipeline_mode<synchronous>, transform_indices = @transform_5, window_bounds = array<i64: 2, 64>}, {pipeline_mode = #tpu.pipeline_mode<synchronous>, transform_indices = @transform_6, window_bounds = array<i64: 2, 1>}, {transform_indices = @transform_7, window_bounds = array<i64: 2, 256>}]} {
    %c0 = arith.constant 0 : index
    %c0_0 = arith.constant 0 : index
    %0 = vector.load %arg1[%c0, %c0_0] : memref<2x256xf32, #tpu.memory_space<vmem>>, vector<2x256xf32>
    %c0_1 = arith.constant 0 : index
    %c0_2 = arith.constant 0 : index
    %1 = vector.load %arg2[%c0_1, %c0_2] : memref<64x2xf32, #tpu.memory_space<vmem>>, vector<64x2xf32>
    %2 = vector.extract_strided_slice %1 {offsets = [0, 0], sizes = [64, 1], strides = [1, 1]} : vector<64x2xf32> to vector<64x1xf32>
    %3 = vector.extract_strided_slice %0 {offsets = [0, 0], sizes = [1, 256], strides = [1, 1]} : vector<2x256xf32> to vector<1x256xf32>
    %4 = vector.broadcast %2 : vector<64x1xf32> to vector<64x256xf32>
    %5 = vector.broadcast %3 : vector<1x256xf32> to vector<64x256xf32>
    %6 = arith.mulf %4, %5 : vector<64x256xf32>
    %7 = vector.extract_strided_slice %1 {offsets = [0, 1], sizes = [64, 1], strides = [1, 1]} : vector<64x2xf32> to vector<64x1xf32>
    %8 = vector.extract_strided_slice %0 {offsets = [1, 0], sizes = [1, 256], strides = [1, 1]} : vector<2x256xf32> to vector<1x256xf32>
    %9 = vector.broadcast %7 : vector<64x1xf32> to vector<64x256xf32>
    %10 = vector.broadcast %8 : vector<1x256xf32> to vector<64x256xf32>
    %11 = arith.mulf %9, %10 : vector<64x256xf32>
    %12 = arith.addf %6, %11 : vector<64x256xf32>
    %c0_3 = arith.constant 0 : index
    %c0_4 = arith.constant 0 : index
    %13 = vector.load %arg3[%c0_3, %c0_4] : memref<64x1xf32, #tpu.memory_space<vmem>>, vector<64x1xf32>
    %14 = vector.broadcast %13 : vector<64x1xf32> to vector<64x256xf32>
    %15 = arith.addf %12, %14 : vector<64x256xf32>
    %16 = math.tanh %15 : vector<64x256xf32>
    %c0_5 = arith.constant 0 : index
    %c0_6 = arith.constant 0 : index
    %17 = vector.load %arg4[%c0_5, %c0_6] : memref<64x64xf32, #tpu.memory_space<vmem>>, vector<64x64xf32>
    %cst = arith.constant dense<0.000000e+00> : vector<64x256xf32>
    %18 = tpu.matmul %17, %16, %cst {dimension_numbers = #tpu.dot_dimension_numbers<[1], [0], [0], [1], [0, 0, 1, 1], [], []>} : vector<64x64xf32>, vector<64x256xf32>, vector<64x256xf32> -> vector<64x256xf32>
    %c0_7 = arith.constant 0 : index
    %c0_8 = arith.constant 0 : index
    %19 = vector.load %arg5[%c0_7, %c0_8] : memref<64x1xf32, #tpu.memory_space<vmem>>, vector<64x1xf32>
    %20 = vector.broadcast %19 : vector<64x1xf32> to vector<64x256xf32>
    %21 = arith.addf %18, %20 : vector<64x256xf32>
    %22 = math.tanh %21 : vector<64x256xf32>
    %c0_9 = arith.constant 0 : index
    %c0_10 = arith.constant 0 : index
    %23 = vector.load %arg6[%c0_9, %c0_10] : memref<2x64xf32, #tpu.memory_space<vmem>>, vector<2x64xf32>
    %cst_11 = arith.constant dense<0.000000e+00> : vector<2x256xf32>
    %24 = tpu.matmul %23, %22, %cst_11 {dimension_numbers = #tpu.dot_dimension_numbers<[1], [0], [0], [1], [0, 0, 1, 1], [], []>} : vector<2x64xf32>, vector<64x256xf32>, vector<2x256xf32> -> vector<2x256xf32>
    %c0_12 = arith.constant 0 : index
    %c0_13 = arith.constant 0 : index
    %25 = vector.load %arg7[%c0_12, %c0_13] : memref<2x1xf32, #tpu.memory_space<vmem>>, vector<2x1xf32>
    %26 = vector.broadcast %25 : vector<2x1xf32> to vector<2x256xf32>
    %27 = arith.addf %24, %26 : vector<2x256xf32>
    %c0_14 = arith.constant 0 : index
    %c0_15 = arith.constant 0 : index
    %28 = vector.load %arg8[%c0_14, %c0_15] : memref<2x256xf32, #tpu.memory_space<vmem>>, vector<2x256xf32>
    tpu.vector_store %arg8[%c0_14, %c0_15], %27 {strides = array<i32>} : memref<2x256xf32, #tpu.memory_space<vmem>>, vector<2x256xf32>,
    return
  }
  func.func @transform_0(%arg0: i32) -> (i32, i32) {
    %c0_i32 = arith.constant 0 : i32
    %c0_i32_0 = arith.constant 0 : i32
    return %c0_i32, %arg0 : i32, i32
  }
  func.func @transform_1(%arg0: i32) -> (i32, i32) {
    %c0_i32 = arith.constant 0 : i32
    %c0_i32_0 = arith.constant 0 : i32
    %c0_i32_1 = arith.constant 0 : i32
    return %c0_i32, %c0_i32_0 : i32, i32
  }
  func.func @transform_2(%arg0: i32) -> (i32, i32) {
    %c0_i32 = arith.constant 0 : i32
    %c0_i32_0 = arith.constant 0 : i32
    %c0_i32_1 = arith.constant 0 : i32
    return %c0_i32, %c0_i32_0 : i32, i32
  }
  func.func @transform_3(%arg0: i32) -> (i32, i32) {
    %c0_i32 = arith.constant 0 : i32
    %c0_i32_0 = arith.constant 0 : i32
    %c0_i32_1 = arith.constant 0 : i32
    return %c0_i32, %c0_i32_0 : i32, i32
  }
  func.func @transform_4(%arg0: i32) -> (i32, i32) {
    %c0_i32 = arith.constant 0 : i32
    %c0_i32_0 = arith.constant 0 : i32
    %c0_i32_1 = arith.constant 0 : i32
    return %c0_i32, %c0_i32_0 : i32, i32
  }
  func.func @transform_5(%arg0: i32) -> (i32, i32) {
    %c0_i32 = arith.constant 0 : i32
    %c0_i32_0 = arith.constant 0 : i32
    %c0_i32_1 = arith.constant 0 : i32
    return %c0_i32, %c0_i32_0 : i32, i32
  }
  func.func @transform_6(%arg0: i32) -> (i32, i32) {
    %c0_i32 = arith.constant 0 : i32
    %c0_i32_0 = arith.constant 0 : i32
    %c0_i32_1 = arith.constant 0 : i32
    return %c0_i32, %c0_i32_0 : i32, i32
  }
  func.func @transform_7(%arg0: i32) -> (i32, i32) {
    %c0_i32 = arith.constant 0 : i32
    %c0_i32_0 = arith.constant 0 : i32
    return %c0_i32, %arg0 : i32, i32
  }
}

</mosaic_0001>

<bundles_post_ra>
// kernel: tpu_custom_call.1
= control target key start
LH: loop header
LB: loop body
LE: loop exit
PB: predicated region body
PF: predicated region fallthrough
CT: control target
= control target key end

     0   :  { %12 = vsyncpa [#allocation3], 0  ;;  %s1333_s0 = inlined_call_operand.vmem [shape: f32[2,512], index: 0, kind: input, shape index: {}]   ;;  %s1334_s1 = inlined_call_operand.vmem [shape: f32[64,2], index: 1, kind: input, shape index: {}]   ;;  %s1335_s2 = inlined_call_operand.vmem [shape: f32[64,1], index: 2, kind: input, shape index: {}]   ;;  %s1336_s3 = inlined_call_operand.vmem [shape: f32[64,64], index: 3, kind: input, shape index: {}]   ;;  %s1337_s4 = inlined_call_operand.vmem [shape: f32[64,1], index: 4, kind: input, shape index: {}]   ;;  %s1338_s5 = inlined_call_operand.vmem [shape: f32[2,64], index: 5, kind: input, shape index: {}]   ;;  %s1339_s6 = inlined_call_operand.vmem [shape: f32[2,1], index: 6, kind: input, shape index: {}]   ;;  %s1340_s7 = inlined_call_operand.hbm [shape: f32[2,512], index: 7, kind: output, shape index: {}]  }
   0x1   :  { %14 = vsyncpa [#allocation3 + $0x1], 0  ;;  %s1081_s24 = smov 0   ;;  %s1083_s25 = smov 0  }
   0x2   :  { %s1085_s26 = smov 0   ;;  %s1087_s27 = smov 0  }
   0x3 LB: > { %s1102_s28 = sadd.s32 4294967295, %s1037_s27   ;;  %s814_s29 = sadd.s32 4294967294, %s1037_s27   ;;  %s1037_s27 = sphi %s1087_s27, %s1346_s27   ;;  %s1033_s26 = sphi %s1085_s26, %s1345_s26   ;;  %s1029_s25 = sphi %s1083_s25, %s1344_s25   ;;  %s1025_s24 = sphi %s1081_s24, %s1343_s24  }
   0x4   : > { %s1106_s30 = sadd.s32 1, %s1037_s27   ;;  %s179_s8 = sadd.s32 1, %s1033_s26 }
   0x5   : > { %s176_s9 = ssub.s32 %s1037_s27, %s1106_s30  ;;  %p189_p0 = scmp.ne.s32.totalorder %s1033_s26, %s1029_s25 }
   0x6   : > { %p177_p1 = scmp.eq.s32.totalorder %s176_s9, 0  ;;  %p190_p2 = scmp.eq.s32.totalorder %s1102_s28, 1 }
   0x7   : > { %p195_p3 = scmp.ne.s32.totalorder %s1029_s25, %s1025_s24  ;;  %p196_p4 = scmp.eq.s32.totalorder %s814_s29, 1 }
   0x8   : > { %s1117_s10 = scalar_select %p177_p1, %s1033_s26, %s179_s8  }
   0x9   : > { %p1119_p5 = por %p190_p2, %p189_p0  ;;  %p1123_p6 = por %p196_p4, %p195_p3 }
   0xa   : > { %p817_p7 = scmp.ge.s32.totalorder %s1037_s27, 1  ;;  %p241_p8 = scmp.lt.s32.totalorder %s1037_s27, 3 }
   0xc   : > { %p242_p9 = pnand %p817_p7, %p241_p8 }
   0xd   : > { %s819_s21 = sshll.u32 (!%p242_p9), %s1102_s28, 1  ;;  %s270_s16 = sand.u32 (!%p242_p9), 1, %s1029_s25  }
   0xe   : > { %245 = sbr.rel (%p242_p9) target bundleno = 527 (0x20f), region = 48  ;;  %p274_p10 = scmp.lt.s32.totalorder (!%p242_p9), %s819_s21, 3 }
   0xf   : > { %s818_s17 = sshll.u32 (!%p242_p9), %s270_s16, 2  ;;  %s844_s18 = sshll.u32 (!%p242_p9), %s1102_s28, 2 }
  0x10   : > { %s739_s28 = scalar_lea.sflag (!%p242_p9), [#allocation3], %s270_s16  ;;  %s995_s15 = scalar_lea.hbm (!%p242_p9), %s1340_s7, 8 }
  0x13   : > { %v288_v0 = vld [vmem:[%s1334_s1 + $0x38] sm:$0xff]  ;;  %v287_v1 = vld [vmem:[%s1334_s1 + $0x30] sm:$0xff]  ;;  %v286_v2 = vld [vmem:[%s1334_s1 + $0x28] sm:$0xff]  ;;  %v1039_v3 = vmov 0   ;;  %v1040_v4 = vmov 1   ;;  %s1348_s21 = smov (!%p274_p10, %s819_s21), 3 }
  0x14   : > { %906 = vset.pattern.permute.xlu2 %v1039_v3  ;;  %904 = vset.pattern.permute.xlu1 %v1039_v3  ;;  %v285_v5 = vld [vmem:[%s1334_s1 + $0x20] sm:$0xff]  ;;  %v429_v6 = vld [vmem:[%s1335_s2 + $0x38] sm:$0xff]  ;;  %v428_v8 = vld [vmem:[%s1335_s2 + $0x30] sm:$0xff]  ;;  %s820_s22 = sshll.u32 %s1348_s21, 1  ;;  %vm558_vm0 = vcmask 523264   ;;  %s750_s21 = scalar_lea.hbm %s1340_s7, %s844_s18  ;;  %vm734_vm1 = vcmask 1041408  }
  0x15   : > { %902 = vset.pattern.permute.xlu0 %v1039_v3  ;;  %321 = vperm.xlu1 %904, %v287_v1   ;;  %v284_v7 = vld [vmem:[%s1334_s1 + $0x18] sm:$0xff]  ;;  %v283_v9 = vld [vmem:[%s1334_s1 + $0x10] sm:$0xff]  ;;  %v427_v10 = vld [vmem:[%s1335_s2 + $0x28] sm:$0xff]  ;;  %s277_s8 = scalar_lea.vmem %s1333_s0, %s820_s22  ;;  %s272_s22 = scalar_lea.vmem [#allocation2], %s818_s17 }
  0x16   : > { %326 = vperm.xlu0 %902, %v288_v0   ;;  %316 = vperm.xlu2 %906, %v286_v2   ;;  %v282_v11 = vld [vmem:[%s1334_s1 + $0x8] sm:$0xff]  ;;  %v426_v12 = vld [vmem:[%s1335_s2 + $0x20] sm:$0xff]  ;;  %v425_v14 = vld [vmem:[%s1335_s2 + $0x18] sm:$0xff]  ;;  %s752_s23 = sshll.u32 %s272_s22, 4  ;;  %s754_s29 = sshll.u32 %s750_s21, 4  ;;  %s753_s23 = int_to_ptr.vmem [resolvable:$true] %s752_s23  ;;  %s755_s29 = int_to_ptr.hbm [resolvable:$true] %s754_s29 }
  0x17   : > { %v281_v13 = vld [vmem:[%s1334_s1] sm:$0xff]  ;;  %v424_v15 = vld [vmem:[%s1335_s2 + $0x10] sm:$0xff]  ;;  %v423_v17 = vld [vmem:[%s1335_s2 + $0x8] sm:$0xff] }
  0x18   : > { %v422_v16 = vld [vmem:[%s1335_s2] sm:$0xff]  ;;  %v517_v18 = vld [vmem:[%s1337_s4 + $0x38] sm:$0xff]  ;;  %v516_v20 = vld [vmem:[%s1337_s4 + $0x30] sm:$0xff] }
  0x19   : > { %v513_v19 = vld [vmem:[%s1337_s4 + $0x18] sm:$0xff]  ;;  %v515_v21 = vld [vmem:[%s1337_s4 + $0x28] sm:$0xff]  ;;  %v510_v22 = vld [vmem:[%s1337_s4] sm:$0xff] }
  0x1a   : > { %v514_v23 = vld [vmem:[%s1337_s4 + $0x20] sm:$0xff]  ;;  %v512_v24 = vld [vmem:[%s1337_s4 + $0x10] sm:$0xff]  ;;  %v511_v25 = vld [vmem:[%s1337_s4 + $0x8] sm:$0xff] }
  0x1b   : > { %v682_v26 = vld [vmem:[%s1339_s6] sm:$0x3] }
  0x1c   : > { %v280_v31 = vld [vmem:[%s277_s8] sm:$0xf]  ;;  %s989_s8 = sshra.s32 %s755_s29, 4  ;;  %s990_s8 = int_to_ptr.hbm [resolvable:$true] %s989_s8 }
  0x1d   : > { %905 = vset.pattern.permute.xlu1 %v1040_v4  ;;  %v384_v32 = vperm.slane %v280_v31, 1  ;;  %v385_v33 = vperm.slane %v280_v31, 3  ;;  %v330_v35 = vperm.slane %v280_v31, 0  ;;  %v331_v36 = vperm.slane %v280_v31, 2  ;;  %s991_s9 = scalar_lea.hbm %s990_s8, 4  ;;  %p996_p0 = scmp.lt.s32.totalorder %s990_s8, %s1340_s7 }
  0x1e   : > { %903 = vset.pattern.permute.xlu0 %v1040_v4  ;;  %907 = vset.pattern.permute.xlu2 %v1040_v4  ;;  %p992_p11 = scmp.ne.s32.totalorder %s990_s8, %s991_s9  ;;  %p997_p1 = scmp.lt.s32.totalorder %s995_s15, %s991_s9 }
  0x1f   : > { %381 = vperm.xlu0 %903, %v288_v0   ;;  %377 = vperm.xlu1 %905, %v287_v1   ;;  %v1208_v39 = vperm.slane %v384_v32, 1  ;;  %v1210_v40 = vperm.slane %v385_v33, 1  ;;  %v1212_v41 = vperm.slane %v330_v35, 0  ;;  %v1214_v42 = vperm.slane %v331_v36, 0 }
  0x20   : > { %373 = vperm.xlu2 %907, %v286_v2   ;;  %p993_p12 = pnand %p992_p11, %p1119_p5  ;;  %p998_p2 = por %p997_p1, %p996_p0 }
  0x22   : > { %p994_p13 = pneg %p993_p12 }
  0x24   : > { %p999_p3 = pnand %p998_p2, %p994_p13 }
  0x27   : > { %908 = vset.pattern.permute.xlu1 %v1039_v3  ;;  %369 = vperm.xlu0 %903, %v285_v5  }
  0x28   : > { %909 = vset.pattern.permute.xlu2 %v1039_v3  ;;  %467 = vperm.xlu1 %908, %v429_v6  }
  0x29   : > { %311 = vperm.xlu2 %909, %v285_v5  }
  0x2f   : > { %365 = vperm.xlu0 %903, %v284_v7  }
  0x30   : > { %462 = vperm.xlu1 %908, %v428_v8  }
  0x31   : > { %306 = vperm.xlu2 %909, %v284_v7  }
  0x37   : > { %361 = vperm.xlu0 %903, %v283_v9  }
  0x38   : > { %457 = vperm.xlu1 %908, %v427_v10  }
  0x39   : > { %301 = vperm.xlu2 %909, %v283_v9  }
  0x3f   : > { %357 = vperm.xlu0 %903, %v282_v11  }
  0x40   : > { %452 = vperm.xlu1 %908, %v426_v12  }
  0x41   : > { %296 = vperm.xlu2 %909, %v282_v11  }
  0x47   : > { %353 = vperm.xlu0 %903, %v281_v13  }
  0x48   : > { %447 = vperm.xlu1 %908, %v425_v14  }
  0x49   : > { %291 = vperm.xlu2 %909, %v281_v13  }
  0x4f   : > { %910 = vset.pattern.permute.xlu0 %v1039_v3 }
  0x50   : > { %442 = vperm.xlu1 %908, %v424_v15   ;;  %432 = vperm.xlu0 %910, %v422_v16  }
  0x51   : > { %437 = vperm.xlu2 %909, %v423_v17  }
  0x58   : > { %555 = vperm.xlu1 %908, %v517_v18   ;;  %535 = vperm.xlu0 %910, %v513_v19  }
  0x59   : > { %550 = vperm.xlu2 %909, %v516_v20  }
  0x60   : > { %545 = vperm.xlu1 %908, %v515_v21   ;;  %520 = vperm.xlu0 %910, %v510_v22  }
  0x61   : > { %540 = vperm.xlu2 %909, %v514_v23  }
  0x68   : > { %530 = vperm.xlu1 %908, %v512_v24  }
  0x69   : > { %525 = vperm.xlu2 %909, %v511_v25  }
  0x70   : > { %685 = vperm.xlu1 %908, %v682_v26   ;;  %v317_v27 = vpop.permute.xlu2 %316 }
  0x71   : > { %v346_v3 = vmul.f32 %v1212_v41, %v317_v27  ;;  %v347_v4 = vmul.f32 %v1214_v42, %v317_v27 }
  0x7a   : > { %v374_v28 = vpop.permute.xlu2 %373 }
  0x7b   : > { %v400_v5 = vmul.f32 %v1208_v39, %v374_v28  ;;  %v401_v6 = vmul.f32 %v1210_v40, %v374_v28 }
  0x7d   : > { %v416_v8 = vadd.f32 %v400_v5, %v346_v3  ;;  %v417_v9 = vadd.f32 %v401_v6, %v347_v4 }
  0x83   : > { %v312_v34 = vpop.permute.xlu2 %311 }
  0x84   : > { %v344_v15 = vmul.f32 %v1212_v41, %v312_v34  ;;  %v345_v16 = vmul.f32 %v1214_v42, %v312_v34 }
  0x87   : > { %v322_v29 = vpop.permute.xlu1 %321 }
  0x88   : > { %v327_v30 = vpop.permute.xlu0 %326  ;;  %v348_v56 = vmul.f32 %v1212_v41, %v322_v29  ;;  %v349_v57 = vmul.f32 %v1214_v42, %v322_v29 }
  0x89   : > { %v350_v45 = vmul.f32 %v1212_v41, %v327_v30  ;;  %v351_v46 = vmul.f32 %v1214_v42, %v327_v30 }
  0x8b   : > { %v1220_v47 = vpop.permute.xlu2 %306 }
  0x8c   : > { %v342_v30 = vmul.f32 %v1212_v41, %v1220_v47  ;;  %v343_v31 = vmul.f32 %v1214_v42, %v1220_v47 }
  0x91   : > { %v382_v37 = vpop.permute.xlu0 %381  ;;  %v378_v38 = vpop.permute.xlu1 %377 }
  0x92   : > { %v404_v43 = vmul.f32 %v1208_v39, %v382_v37  ;;  %v405_v44 = vmul.f32 %v1210_v40, %v382_v37  ;;  %v402_v54 = vmul.f32 %v1208_v39, %v378_v38  ;;  %v403_v55 = vmul.f32 %v1210_v40, %v378_v38 }
  0x93   : > { %v1226_v63 = vpop.permute.xlu2 %301 }
  0x94   : > { %v420_v49 = vadd.f32 %v404_v43, %v350_v45  ;;  %v421_v50 = vadd.f32 %v405_v44, %v351_v46  ;;  %v418_v59 = vadd.f32 %v402_v54, %v348_v56  ;;  %v419_v60 = vadd.f32 %v403_v55, %v349_v57 }
  0x99   : > { %v370_v48 = vpop.permute.xlu0 %369 }
  0x9a   : > { %v468_v51 = vpop.permute.xlu1 %467  ;;  %v398_v17 = vmul.f32 %v1208_v39, %v370_v48  ;;  %v399_v18 = vmul.f32 %v1210_v40, %v370_v48 }
  0x9b   : > { %v484_v52 = vadd.f32 %v468_v51, %v420_v49  ;;  %v485_v53 = vadd.f32 %v468_v51, %v421_v50  ;;  %v297_v19 = vpop.permute.xlu2 %296  ;;  %v340_v51 = vmul.f32 %v1212_v41, %v1226_v63 }
  0x9c   : > { %v414_v21 = vadd.f32 %v398_v17, %v344_v15  ;;  %v415_v22 = vadd.f32 %v399_v18, %v345_v16  ;;  %v338_v48 = vmul.f32 %v1212_v41, %v297_v19  ;;  %v339_v50 = vmul.f32 %v1214_v42, %v297_v19  ;;  %v508_v15 = vld [vmem:[%s1336_s3 + $0x30] sm:$0xff]  ;;  %v509_v17 = vld [vmem:[%s1336_s3 + $0x38] sm:$0xff]  ;;  %v506_v19 = vld [vmem:[%s1336_s3 + $0x20] sm:$0xff] }
  0x9d   : > { %911 = vtanh.f32 %v484_v52  ;;  %v341_v52 = vmul.f32 %v1214_v42, %v1226_v63  ;;  %v504_v16 = vld [vmem:[%s1336_s3 + $0x10] sm:$0xff]  ;;  %v505_v18 = vld [vmem:[%s1336_s3 + $0x18] sm:$0xff] }
  0x9e   : > { %913 = vtanh.f32 %v485_v53 }
  0xa1   : > { %v366_v58 = vpop.permute.xlu0 %365 }
  0xa2   : > { %v463_v61 = vpop.permute.xlu1 %462  ;;  %v396_v28 = vmul.f32 %v1208_v39, %v366_v58  ;;  %v397_v29 = vmul.f32 %v1210_v40, %v366_v58 }
  0xa3   : > { %v912_v62 = vpop.eup %911  ;;  %v482_v0 = vadd.f32 %v463_v61, %v418_v59  ;;  %v483_v1 = vadd.f32 %v463_v61, %v419_v60  ;;  %v292_v32 = vpop.permute.xlu2 %291 }
  0xa4   : > { %v914_v2 = vpop.eup %913  ;;  %591 = vmatpush.msra.mxu0 %v912_v62  ;;  %845 = vmatpush.msra.mxu2 %v912_v62  ;;  %v412_v34 = vadd.f32 %v396_v28, %v342_v30  ;;  %v413_v35 = vadd.f32 %v397_v29, %v343_v31  ;;  %v336_v57 = vmul.f32 %v1212_v41, %v292_v32 }
  0xa5   : > { %915 = vtanh.f32 %v482_v0  ;;  %632 = vmatpush.msra.mxu1 %v914_v2  ;;  %853 = vmatpush.msra.mxu3 %v914_v2  ;;  %v337_v61 = vmul.f32 %v1214_v42, %v292_v32 }
  0xa6   : > { %917 = vtanh.f32 %v483_v1 }
  0xa9   : > { %v362_v7 = vpop.permute.xlu0 %361 }
  0xaa   : > { %v458_v10 = vpop.permute.xlu1 %457  ;;  %v394_v49 = vmul.f32 %v1208_v39, %v362_v7  ;;  %v395_v47 = vmul.f32 %v1210_v40, %v362_v7 }
  0xab   : > { %v916_v11 = vpop.eup %915  ;;  %v480_v12 = vadd.f32 %v458_v10, %v416_v8  ;;  %v481_v13 = vadd.f32 %v458_v10, %v417_v9  ;;  %v438_v58 = vpop.permute.xlu2 %437 }
  0xac   : > { %v918_v14 = vpop.eup %917  ;;  %592 = vmatpush.msra.mxu0 %v916_v11  ;;  %846 = vmatpush.msra.mxu2 %v916_v11  ;;  %v410_v59 = vadd.f32 %v394_v49, %v340_v51  ;;  %v411_v60 = vadd.f32 %v395_v47, %v341_v52  ;;  %v502_v11 = vld [vmem:[%s1336_s3] sm:$0xff] }
  0xad   : > { %919 = vtanh.f32 %v480_v12  ;;  %633 = vmatpush.msra.mxu1 %v918_v14  ;;  %854 = vmatpush.msra.mxu3 %v918_v14  ;;  %v507_v12 = vld [vmem:[%s1336_s3 + $0x28] sm:$0xff] }
  0xae   : > { %921 = vtanh.f32 %v481_v13  ;;  %v503_v14 = vld [vmem:[%s1336_s3 + $0x8] sm:$0xff] }
  0xb1   : > { %v358_v20 = vpop.permute.xlu0 %357 }
  0xb2   : > { %v453_v23 = vpop.permute.xlu1 %452  ;;  %v392_v38 = vmul.f32 %v1208_v39, %v358_v20  ;;  %v393_v46 = vmul.f32 %v1210_v40, %v358_v20 }
  0xb3   : > { %v920_v24 = vpop.eup %919  ;;  %v478_v25 = vadd.f32 %v453_v23, %v414_v21  ;;  %v479_v26 = vadd.f32 %v453_v23, %v415_v22  ;;  %v551_v29 = vpop.permute.xlu2 %550 }
  0xb4   : > { %v922_v27 = vpop.eup %921  ;;  %593 = vmatpush.msra.mxu0 %v920_v24  ;;  %847 = vmatpush.msra.mxu2 %v920_v24  ;;  %v408_v53 = vadd.f32 %v392_v38, %v338_v48  ;;  %v409_v55 = vadd.f32 %v393_v46, %v339_v50 }
  0xb5   : > { %923 = vtanh.f32 %v478_v25  ;;  %634 = vmatpush.msra.mxu1 %v922_v27  ;;  %855 = vmatpush.msra.mxu3 %v922_v27 }
  0xb6   : > { %925 = vtanh.f32 %v479_v26  ;;  %v472_v2 = vadd.f32 %v438_v58, %v408_v53  ;;  %v473_v6 = vadd.f32 %v438_v58, %v409_v55 }
  0xb9   : > { %v354_v33 = vpop.permute.xlu0 %353 }
  0xba   : > { %v448_v36 = vpop.permute.xlu1 %447  ;;  %v390_v54 = vmul.f32 %v1208_v39, %v354_v33  ;;  %v391_v56 = vmul.f32 %v1210_v40, %v354_v33 }
  0xbb   : > { %v924_v37 = vpop.eup %923  ;;  %v476_v43 = vadd.f32 %v448_v36, %v412_v34  ;;  %v477_v44 = vadd.f32 %v448_v36, %v413_v35  ;;  %v541_v46 = vpop.permute.xlu2 %540 }
  0xbc   : > { %v926_v45 = vpop.eup %925  ;;  %594 = vmatpush.msra.mxu0 %v924_v37  ;;  %848 = vmatpush.msra.mxu2 %v924_v37  ;;  %v406_v63 = vadd.f32 %v390_v54, %v336_v57  ;;  %v407_v39 = vadd.f32 %v391_v56, %v337_v61 }
  0xbd   : > { %927 = vtanh.f32 %v476_v43  ;;  %635 = vmatpush.msra.mxu1 %v926_v45  ;;  %856 = vmatpush.msra.mxu3 %v926_v45 }
  0xbe   : > { %929 = vtanh.f32 %v477_v44 }
  0xc2   : > { %v443_v62 = vpop.permute.xlu1 %442  ;;  %v433_v0 = vpop.permute.xlu0 %432 }
  0xc3   : > { %v928_v1 = vpop.eup %927  ;;  %v474_v3 = vadd.f32 %v443_v62, %v410_v59  ;;  %v475_v4 = vadd.f32 %v443_v62, %v411_v60  ;;  %v470_v40 = vadd.f32 %v433_v0, %v406_v63  ;;  %v471_v41 = vadd.f32 %v433_v0, %v407_v39  ;;  %v526_v0 = vpop.permute.xlu2 %525 }
  0xc4   : > { %v930_v5 = vpop.eup %929  ;;  %595 = vmatpush.msra.mxu0 %v928_v1  ;;  %849 = vmatpush.msra.mxu2 %v928_v1 }
  0xc5   : > { %931 = vtanh.f32 %v474_v3  ;;  %636 = vmatpush.msra.mxu1 %v930_v5  ;;  %857 = vmatpush.msra.mxu3 %v930_v5 }
  0xc6   : > { %933 = vtanh.f32 %v475_v4 }
  0xc7   : > { %935 = vtanh.f32 %v472_v2 }
  0xc8   : > { %937 = vtanh.f32 %v473_v6 }
  0xc9   : > { %939 = vtanh.f32 %v470_v40 }
  0xca   : > { %941 = vtanh.f32 %v471_v41  ;;  %v556_v26 = vpop.permute.xlu1 %555  ;;  %v536_v49 = vpop.permute.xlu0 %535 }
  0xcb   : > { %v932_v42 = vpop.eup %931 }
  0xcc   : > { %v934_v7 = vpop.eup %933  ;;  %596 = vmatpush.msra.mxu0 %v932_v42  ;;  %850 = vmatpush.msra.mxu2 %v932_v42 }
  0xcd   : > { %v936_v8 = vpop.eup %935  ;;  %637 = vmatpush.msra.mxu1 %v934_v7  ;;  %858 = vmatpush.msra.mxu3 %v934_v7 }
  0xce   : > { %v938_v9 = vpop.eup %937  ;;  %597 = vmatpush.msra.mxu0 %v936_v8  ;;  %851 = vmatpush.msra.mxu2 %v936_v8 }
  0xcf   : > { %v940_v10 = vpop.eup %939  ;;  %638 = vmatpush.msra.mxu1 %v938_v9  ;;  %859 = vmatpush.msra.mxu3 %v938_v9 }
  0xd0   : > { %v942_v13 = vpop.eup %941  ;;  %598 = vmatpush.msra.mxu0 %v940_v10  ;;  %852 = vmatpush.msra.mxu2 %v940_v10  ;;  %v681_v10 = vld [vmem:[%s1338_s5] sm:$0x3] }
  0xd1   : > { %639 = vmatpush.msra.mxu1 %v942_v13  ;;  %860 = vmatpush.msra.mxu3 %v942_v13 }
  0xd2   : > { %821 = vmatmul.msk.f32.vlgmr.msra.gmra.mxu0 %vm558_vm0, %v502_v11  ;;  %826 = vmatmul.msk.f32.vlgmr.msra.gmra.mxu2 %vm558_vm0, %v507_v12  ;;  %v546_v36 = vpop.permute.xlu1 %545  ;;  %v521_v3 = vpop.permute.xlu0 %520 }
  0xd3   : > { %829 = vmatmul.msk.f32.vlgmr.msra.gmra.mxu1 %vm558_vm0, %v502_v11  ;;  %834 = vmatmul.msk.f32.vlgmr.msra.gmra.mxu3 %vm558_vm0, %v507_v12 }
  0xda   : > { %822 = vmatmul.msk.f32.gmra.mxu0 %vm558_vm0, %v503_v14  ;;  %827 = vmatmul.msk.f32.gmra.mxu2 %vm558_vm0, %v508_v15  ;;  %v531_v57 = vpop.permute.xlu1 %530 }
  0xdb   : > { %830 = vmatmul.msk.f32.gmra.mxu1 %vm558_vm0, %v503_v14  ;;  %835 = vmatmul.msk.f32.gmra.mxu3 %vm558_vm0, %v508_v15 }
  0xe2   : > { %823 = vmatmul.msk.f32.gmra.mxu0 %vm558_vm0, %v504_v16  ;;  %828 = vmatmul.msk.f32.gmra.mxu2 %vm558_vm0, %v509_v17  ;;  %v686_v13 = vpop.permute.xlu1 %685 }
  0xe3   : > { %831 = vmatmul.msk.f32.gmra.mxu1 %vm558_vm0, %v504_v16  ;;  %836 = vmatmul.msk.f32.gmra.mxu3 %vm558_vm0, %v509_v17 }
  0xea   : > { %824 = vmatmul.msk.f32.gmra.mxu0 %vm558_vm0, %v505_v18 }
  0xeb   : > { %832 = vmatmul.msk.f32.gmra.mxu1 %vm558_vm0, %v505_v18 }
  0xf2   : > { %825 = vmatmul.msk.f32.gmra.mxu0 %vm558_vm0, %v506_v19 }
  0xf3   : > { %833 = vmatmul.msk.f32.gmra.mxu1 %vm558_vm0, %v506_v19 }
 0x14f   : > { %v600_v20 = vpop.f32.mrf.mxu0 }
 0x150   : > { %v641_v21 = vpop.f32.mrf.mxu1  ;;  %v601_v63 = vadd.f32 %v600_v20, %v521_v3 }
 0x151   : > { %v642_v5 = vadd.f32 %v641_v21, %v521_v3 }
 0x155   : > { %v615_v22 = vpop.f32.mrf.mxu2 }
 0x156   : > { %v656_v23 = vpop.f32.mrf.mxu3  ;;  %v616_v44 = vadd.f32 %v615_v22, %v546_v36 }
 0x157   : > { %v603_v24 = vpop.f32.mrf.mxu0  ;;  %v657_v48 = vadd.f32 %v656_v23, %v546_v36 }
 0x158   : > { %v644_v25 = vpop.f32.mrf.mxu1  ;;  %v604_v2 = vadd.f32 %v603_v24, %v526_v0 }
 0x159   : > { %v645_v4 = vadd.f32 %v644_v25, %v526_v0 }
 0x15d   : > { %v618_v27 = vpop.f32.mrf.mxu2 }
 0x15e   : > { %v659_v28 = vpop.f32.mrf.mxu3  ;;  %v619_v33 = vadd.f32 %v618_v27, %v551_v29 }
 0x15f   : > { %v606_v30 = vpop.f32.mrf.mxu0  ;;  %v660_v37 = vadd.f32 %v659_v28, %v551_v29 }
 0x160   : > { %v647_v31 = vpop.f32.mrf.mxu1  ;;  %v607_v61 = vadd.f32 %v606_v30, %v531_v57 }
 0x161   : > { %v648_v1 = vadd.f32 %v647_v31, %v531_v57 }
 0x165   : > { %v621_v32 = vpop.f32.mrf.mxu2 }
 0x166   : > { %v622_v34 = vadd.f32 %v621_v32, %v556_v26  ;;  %v662_v35 = vpop.f32.mrf.mxu3 }
 0x167   : > { %v663_v38 = vadd.f32 %v662_v35, %v556_v26  ;;  %v609_v43 = vpop.f32.mrf.mxu0 }
 0x168   : > { %943 = vtanh.f32 %v622_v34  ;;  %v650_v45 = vpop.f32.mrf.mxu1  ;;  %v610_v53 = vadd.f32 %v609_v43, %v536_v49 }
 0x169   : > { %945 = vtanh.f32 %v663_v38  ;;  %v651_v58 = vadd.f32 %v650_v45, %v536_v49 }
 0x16a   : > { %947 = vtanh.f32 %v619_v33 }
 0x16b   : > { %949 = vtanh.f32 %v660_v37 }
 0x16c   : > { %951 = vtanh.f32 %v616_v44 }
 0x16d   : > { %953 = vtanh.f32 %v657_v48 }
 0x16e   : > { %v944_v47 = vpop.eup %943 }
 0x16f   : > { %v946_v50 = vpop.eup %945  ;;  %v612_v51 = vpop.f32.mrf.mxu0  ;;  %699 = vmatpush.msrb.mxu2 %v944_v47 }
 0x170   : > { %v948_v52 = vpop.eup %947  ;;  %v613_v54 = vadd.f32 %v612_v51, %v541_v46  ;;  %v653_v55 = vpop.f32.mrf.mxu1  ;;  %719 = vmatpush.msrb.mxu3 %v946_v50 }
 0x171   : > { %v950_v56 = vpop.eup %949  ;;  %v654_v59 = vadd.f32 %v653_v55, %v541_v46  ;;  %700 = vmatpush.msrb.mxu2 %v948_v52 }
 0x172   : > { %v952_v60 = vpop.eup %951  ;;  %955 = vtanh.f32 %v613_v54  ;;  %720 = vmatpush.msrb.mxu3 %v950_v56 }
 0x173   : > { %v954_v62 = vpop.eup %953  ;;  %957 = vtanh.f32 %v654_v59  ;;  %701 = vmatpush.msrb.mxu2 %v952_v60 }
 0x174   : > { %959 = vtanh.f32 %v610_v53  ;;  %721 = vmatpush.msrb.mxu3 %v954_v62 }
 0x175   : > { %961 = vtanh.f32 %v651_v58 }
 0x176   : > { %963 = vtanh.f32 %v607_v61 }
 0x177   : > { %965 = vtanh.f32 %v648_v1 }
 0x178   : > { %v956_v6 = vpop.eup %955  ;;  %967 = vtanh.f32 %v604_v2 }
 0x179   : > { %v958_v39 = vpop.eup %957  ;;  %969 = vtanh.f32 %v645_v4  ;;  %702 = vmatpush.msrb.mxu2 %v956_v6 }
 0x17a   : > { %v960_v40 = vpop.eup %959  ;;  %971 = vtanh.f32 %v601_v63  ;;  %722 = vmatpush.msrb.mxu3 %v958_v39 }
 0x17b   : > { %v962_v41 = vpop.eup %961  ;;  %973 = vtanh.f32 %v642_v5  ;;  %703 = vmatpush.msrb.mxu2 %v960_v40 }
 0x17c   : > { %v964_v42 = vpop.eup %963  ;;  %723 = vmatpush.msrb.mxu3 %v962_v41 }
 0x17d   : > { %v966_v7 = vpop.eup %965  ;;  %704 = vmatpush.msrb.mxu2 %v964_v42 }
 0x17e   : > { %v968_v8 = vpop.eup %967  ;;  %724 = vmatpush.msrb.mxu3 %v966_v7 }
 0x17f   : > { %v970_v9 = vpop.eup %969  ;;  %705 = vmatpush.msrb.mxu2 %v968_v8 }
 0x180   : > { %v972_v11 = vpop.eup %971  ;;  %725 = vmatpush.msrb.mxu3 %v970_v9 }
 0x181   : > { %v974_v12 = vpop.eup %973  ;;  %706 = vmatpush.msrb.mxu2 %v972_v11 }
 0x182   : > { %726 = vmatpush.msrb.mxu3 %v974_v12  ;;  %837 = vmatmul.msk.f32.vlgmr.msrb.gmra.mxu2 %vm558_vm0, %v681_v10 }
 0x183   : > { %838 = vmatmul.msk.f32.vlgmr.msrb.gmra.mxu3 %vm558_vm0, %v681_v10 }
 0x205   : > { %v708_v14 = vpop.f32.mrf.mxu2 }
 0x206   : > { %v728_v15 = vpop.f32.mrf.mxu3  ;;  %v709_v17 = vadd.f32 %v708_v14, %v686_v13 }
 0x207   : > { %v729_v16 = vadd.f32 %v728_v15, %v686_v13 }
 0x209   : > { %v733_v18 = vrot.slane %v729_v16, 6 }
 0x20b   : > { %v735_v19 = vsel %vm734_vm1, %v709_v17, %v733_v18 }
 0x20c   : > { %737 = vst [vmem:[%s272_s22] sm:$0xf] %v735_v19 }
 0x20d   : > { %1002 = shalt.err (!%p999_p3)
}
 0x20e   : > { %861 = dma.vmem_to_hbm [thread:$0]  (%p1119_p5), %s753_s23, 64, %s755_s29, %s739_s28  }
 0x20f PF: > { %p867_p4 = scmp.ge.s32.totalorder %s1037_s27, 2  ;;  %s766_s16 = sand.u32 1, %s1025_s24  }
 0x210   : > { %s767_s19 = scalar_lea.sflag [#allocation3], %s766_s16 }
 0x211   : > { %p864_p7 = pnand %p867_p4, %p1123_p6 }
 0x213   : > { %p865_p8 = pneg %p864_p7 }
 0x215   : > { %1020 = dma.done.wait (%p865_p8), %s767_s19, 64  }
 0x216   : > { %1022 = vsyncadd (%p865_p8), %s767_s19, 4294967232  ;;  %p17_p9 = scmp.ge.s32.totalorder %s1106_s30, 4   ;;  %s1343_s24 = smov %s1029_s25 }
 0x217   : > { %s1344_s25 = smov %s1033_s26  ;;  %s1345_s26 = smov %s1117_s10 }
 0x218   : > { %s1346_s27 = smov %s1106_s30  ;;  %19 = sbr.rel (!%p17_p9) target bundleno = 3 (0x3), region = 83 }
 0x21d   :  { %773 = vsyncpa [#allocation3], 1 }
 0x21e   :  { %775 = vsyncpa [#allocation3 + $0x1], 1 }

</bundles_post_ra>
